<compile_context>
chip_gen: v5e
topology: v5e:2x2
jax: 0.10.0
libtpu: 0.0.40
codegen_flags: <defaults>
</compile_context>

<pallas_src>
import functools
from typing import Any, NamedTuple

import jax
import jax.numpy as jnp
from jax.experimental import pallas as pl
from jax.experimental.pallas import tpu as pltpu


def _round_up(n, m):
    return (n + m - 1) // m * m


def _vmem_capacity_bytes(default=64 * 1024 * 1024):
    """Per-core VMEM capacity, generation-aware; falls back to 64 MiB (v7x)."""
    try:
        info = pltpu.get_tpu_info()
        cap = getattr(info, "vmem_capacity_bytes", None)
        if cap:
            return int(cap)
    except Exception:
        pass
    return default


class LinearEmbeddingParams(NamedTuple):
    w_t: jax.Array          # (D_pad, E_pad) = weight.T, padded, compute dtype
    b: jax.Array            # (1, E_pad) f32 bias, padded with zeros
    E: int                  # true embedding_size
    D: int                  # true output_size (= C*H*W of the pooled feature)
    compute_dtype: Any


def prepare_linear_embedding_params(weight, bias, *, compute_dtype=jnp.bfloat16):
    """One-time parameter prep (hoisted out of the per-call forward):
    cast to the streaming dtype, transpose to the MXU-natural (K, N) layout,
    and pad both dims to multiples of 128 (lane-dense, zero padding)."""
    E, D = weight.shape
    D_pad = _round_up(D, 128)
    E_pad = _round_up(E, 128)
    w_t = weight.T.astype(compute_dtype)                    # (D, E)
    if (D_pad, E_pad) != (D, E):
        w_t = jnp.pad(w_t, ((0, D_pad - D), (0, E_pad - E)))
    b = bias.astype(jnp.float32).reshape(1, E)
    if E_pad != E:
        b = jnp.pad(b, ((0, 0), (0, E_pad - E)))
    return LinearEmbeddingParams(w_t=w_t, b=b, E=E, D=D,
                                 compute_dtype=compute_dtype)


# ----------------------------- kernels -------------------------------------


def _resident_kernel(pool_ref, w_ref, b_ref, emb_ref, *, normalize):
    # pool_ref: (tb, D_pad)  w_ref: (D_pad, E_pad)  b_ref: (1, E_pad)
    # emb_ref:  (tb, E_pad) f32
    emb = jnp.dot(pool_ref[...], w_ref[...],
                  preferred_element_type=jnp.float32) + b_ref[...]
    if normalize:
        # F.normalize(p=2, dim=1): x / max(||x||, 1e-12) == x*rsqrt(max(ss,1e-24))
        ss = jnp.sum(emb * emb, axis=1, keepdims=True)
        emb = emb * jax.lax.rsqrt(jnp.maximum(ss, 1e-24))
    emb_ref[...] = emb.astype(emb_ref.dtype)


def _streamed_kernel(pool_ref, w_ref, b_ref, emb_ref, *, normalize):
    # pool_ref: (tb, tk)  w_ref: (tk, E_pad)  b_ref: (1, E_pad)
    # emb_ref:  (tb, E_pad) f32 — doubles as the accumulator (resident over k).
    k = pl.program_id(1)

    @pl.when(k == 0)
    def _():
        emb_ref[...] = jnp.zeros_like(emb_ref)

    emb_ref[...] += jnp.dot(pool_ref[...], w_ref[...],
                            preferred_element_type=jnp.float32)

    @pl.when(k == pl.num_programs(1) - 1)
    def _():
        emb = emb_ref[...] + b_ref[...]
        if normalize:
            ss = jnp.sum(emb * emb, axis=1, keepdims=True)
            emb = emb * jax.lax.rsqrt(jnp.maximum(ss, 1e-24))
        emb_ref[...] = emb.astype(emb_ref.dtype)


# ----------------------------- wrapper --------------------------------------


def _pick_tb(B, sublane, max_tb=128):
    """Smallest batch padding among power-of-two multiples of the packed
    sublane count; ties broken toward the larger tile."""
    cands, t = [], sublane
    while t <= max_tb:
        cands.append(t)
        t *= 2
    if not cands:
        cands = [sublane]
    best, best_pad = cands[0], _round_up(B, cands[0])
    for t in cands[1:]:
        p = _round_up(B, t)
        if p <= best_pad:
            best, best_pad = t, p
    return best, best_pad


def _pick_tk(D_pad, E_pad, tb, csize, budget, max_tk=None):
    """Largest multiple of 128 that divides D_pad and fits the VMEM budget."""
    n = D_pad // 128
    for m in range(n, 0, -1):
        if n % m:
            continue
        tk = 128 * m
        if max_tk is not None and tk > max_tk:
            continue
        est = (2 * tk * E_pad * csize + 2 * tb * tk * csize
               + 2 * tb * E_pad * 4 + 2 * E_pad * 4)
        if est <= budget:
            return tk
    return 128


def linear_embedding_forward(x, params, *, normalize=True,
                             force_streamed=False, tk=None, tb_max=128):
    """Forward pass of LinearEmbedding with an identity `base`.

    x:      (B, C, H, W) input (== `pool` before flattening)
    params: LinearEmbeddingParams from prepare_linear_embedding_params()
    Returns (pool, embedding) like the PyTorch module; embedding is float32.
    """
    B = x.shape[0]
    E, D = params.E, params.D
    D_pad, E_pad = params.w_t.shape
    cdt = params.compute_dtype
    csize = jnp.dtype(cdt).itemsize

    pool = x.reshape(B, -1)                       # pool.view(B, -1)
    assert pool.shape == (B, D), (pool.shape, (B, D))

    sublane = max(8, 32 // csize)                 # 8 f32, 16 bf16, 32 i8/fp8
    tb, B_pad = _pick_tb(B, sublane, tb_max)

    pool_c = pool.astype(cdt)
    if (B_pad, D_pad) != (B, D):
        pool_c = jnp.pad(pool_c, ((0, B_pad - B), (0, D_pad - D)))

    vmem_cap = _vmem_capacity_bytes()
    budget = int(0.7 * vmem_cap)

    # Resident path: whole (pre-transposed) weight is one constant VMEM block,
    # streamed from HBM exactly once; grid is only batch tiles ("parallel").
    resident_est = (2 * D_pad * E_pad * csize     # weight (worst-case 2 bufs)
                    + 2 * tb * D_pad * csize      # pool tiles
                    + 2 * tb * E_pad * 4          # output tiles
                    + 2 * E_pad * 4)              # bias
    use_resident = (not force_streamed) and resident_est <= budget

    if use_resident:
        grid = (B_pad // tb,)
        in_specs = [
            pl.BlockSpec((tb, D_pad), lambda i: (i, 0)),        # pool
            pl.BlockSpec((D_pad, E_pad), lambda i: (0, 0)),     # weight.T (resident)
            pl.BlockSpec((1, E_pad), lambda i: (0, 0)),         # bias
        ]
        out_specs = pl.BlockSpec((tb, E_pad), lambda i: (i, 0))
        kernel = functools.partial(_resident_kernel, normalize=normalize)
        semantics = ("parallel",)
        vmem_est = resident_est
    else:
        tk_sel = _pick_tk(D_pad, E_pad, tb, csize, budget, max_tk=tk)
        grid = (B_pad // tb, D_pad // tk_sel)
        in_specs = [
            pl.BlockSpec((tb, tk_sel), lambda i, k: (i, k)),    # pool
            pl.BlockSpec((tk_sel, E_pad), lambda i, k: (k, 0)), # weight.T tile
            pl.BlockSpec((1, E_pad), lambda i, k: (0, 0)),      # bias
        ]
        out_specs = pl.BlockSpec((tb, E_pad), lambda i, k: (i, 0))
        kernel = functools.partial(_streamed_kernel, normalize=normalize)
        semantics = ("parallel", "arbitrary")
        vmem_est = (2 * tk_sel * E_pad * csize + 2 * tb * tk_sel * csize
                    + 2 * tb * E_pad * 4 + 2 * E_pad * 4)

    vmem_limit = int(min(vmem_cap, max(8 * 1024 * 1024, 2 * vmem_est)))

    emb_full = pl.pallas_call(
        kernel,
        out_shape=jax.ShapeDtypeStruct((B_pad, E_pad), jnp.float32),
        grid_spec=pltpu.PrefetchScalarGridSpec(
            num_scalar_prefetch=0,
            grid=grid,
            in_specs=in_specs,
            out_specs=out_specs,
        ),
        compiler_params=pltpu.CompilerParams(
            dimension_semantics=semantics,
            vmem_limit_bytes=vmem_limit,
        ),
    )(pool_c, params.w_t, params.b)

    emb = emb_full[:B, :E]
    return pool, emb


# ----------------------------- references -----------------------------------


def _reference_f32(x, weight, bias, normalize=True):
    B = x.shape[0]
    pool = x.reshape(B, -1).astype(jnp.float32)
    emb = jnp.dot(pool, weight.astype(jnp.float32).T,
                  precision=jax.lax.Precision.HIGHEST) + bias
    if normalize:
        nrm = jnp.sqrt(jnp.sum(emb * emb, axis=1, keepdims=True))
        emb = emb / jnp.maximum(nrm, 1e-12)
    return x.reshape(B, -1), emb


def _reference_bf16(x, weight, bias, normalize=True):
    B = x.shape[0]
    pool = x.reshape(B, -1).astype(jnp.bfloat16)
    emb = jnp.dot(pool, weight.astype(jnp.bfloat16).T,
                  preferred_element_type=jnp.float32) + bias.astype(jnp.float32)
    if normalize:
        ss = jnp.sum(emb * emb, axis=1, keepdims=True)
        emb = emb * jax.lax.rsqrt(jnp.maximum(ss, 1e-24))
    return emb


if __name__ == "__main__":
    # Small shapes consistent with the module: output_size = C*H*W = 1024,
    # embedding_size = 200 (module default), batch = 8.
    B, C, H, W = 8, 4, 16, 16
    D = C * H * W            # output_size (1024)
    E = 200                  # embedding_size -> padded to 256 lanes internally

    key = jax.random.PRNGKey(0)
    kx, kw, kb = jax.random.split(key, 3)

    x = jax.random.normal(kx, (B, C, H, W), dtype=jnp.float32)
    # Deterministic nn.Linear-style init: U(-1/sqrt(D), 1/sqrt(D))
    bound = 1.0 / (D ** 0.5)
    weight = jax.random.uniform(kw, (E, D), jnp.float32, -bound, bound)
    bias = jax.random.uniform(kb, (E,), jnp.float32, -bound, bound)

    pool_ref_arr, emb_ref_f32 = _reference_f32(x, weight, bias, normalize=True)
    emb_ref_bf16 = _reference_bf16(x, weight, bias, normalize=True)

    # One-time parameter prep (hoisted out of the per-call path).
    params_bf16 = prepare_linear_embedding_params(weight, bias,
                                                  compute_dtype=jnp.bfloat16)

    # 1) Default path: weight fully VMEM-resident, grid = batch tiles only.
    pool, emb = linear_embedding_forward(x, params_bf16, normalize=True)
    pool, emb = jax.block_until_ready((pool, emb))
    assert pool.shape == (B, D) and emb.shape == (B, E)
    assert jnp.allclose(pool, pool_ref_arr, atol=1e-6, rtol=1e-6)
    assert jnp.allclose(emb, emb_ref_bf16, atol=2e-3, rtol=2e-3)
    assert jnp.allclose(emb, emb_ref_f32, atol=2e-2, rtol=2e-2)

    # 2) Forced K-tiled streaming path (what runs when the weight exceeds the
    #    VMEM budget) — accumulates directly into the f32 output block.
    pool_s, emb_s = linear_embedding_forward(x, params_bf16, normalize=True,
                                             force_streamed=True, tk=512)
    pool_s, emb_s = jax.block_until_ready((pool_s, emb_s))
    assert jnp.allclose(emb_s, emb_ref_bf16, atol=2e-3, rtol=2e-3)
    assert jnp.allclose(emb_s, emb_ref_f32, atol=2e-2, rtol=2e-2)

    # 3) f32-stream path also works.
    params_f32 = prepare_linear_embedding_params(weight, bias,
                                                 compute_dtype=jnp.float32)
    pool32, emb32 = linear_embedding_forward(x, params_f32, normalize=True)
    pool32, emb32 = jax.block_until_ready((pool32, emb32))
    assert jnp.allclose(emb32, emb_ref_f32, atol=1e-2, rtol=1e-2)

    print("KERNEL_OK")
</pallas_src>

<mosaic_0001>
module attributes {stable_mosaic.version = 11 : i64} {
  func.func @_resident_kernel(%arg0: i32, %arg1: memref<16x1024xbf16, #tpu.memory_space<vmem>>, %arg2: memref<1024x256xbf16, #tpu.memory_space<vmem>>, %arg3: memref<1x256xf32, #tpu.memory_space<vmem>>, %arg4: memref<16x256xf32, #tpu.memory_space<vmem>>) attributes {dimension_semantics = [#tpu.dimension_semantics<parallel>], iteration_bounds = array<i64: 1>, scalar_prefetch = 0 : i64, scratch_operands = 0 : i64, tpu.core_type = #tpu.core_type<tc>, window_params = [{transform_indices = @transform_0, window_bounds = array<i64: 16, 1024>}, {pipeline_mode = #tpu.pipeline_mode<synchronous>, transform_indices = @transform_1, window_bounds = array<i64: 1024, 256>}, {pipeline_mode = #tpu.pipeline_mode<synchronous>, transform_indices = @transform_2, window_bounds = array<i64: 1, 256>}, {transform_indices = @transform_3, window_bounds = array<i64: 16, 256>}]} {
    %c0 = arith.constant 0 : index
    %c0_0 = arith.constant 0 : index
    %0 = vector.load %arg1[%c0, %c0_0] : memref<16x1024xbf16, #tpu.memory_space<vmem>>, vector<16x1024xbf16>
    %c0_1 = arith.constant 0 : index
    %c0_2 = arith.constant 0 : index
    %1 = vector.load %arg2[%c0_1, %c0_2] : memref<1024x256xbf16, #tpu.memory_space<vmem>>, vector<1024x256xbf16>
    %cst = arith.constant dense<0.000000e+00> : vector<16x256xf32>
    %2 = tpu.matmul %0, %1, %cst {dimension_numbers = #tpu.dot_dimension_numbers<[1], [0], [0], [1], [0, 0, 1, 1], [], []>} : vector<16x1024xbf16>, vector<1024x256xbf16>, vector<16x256xf32> -> vector<16x256xf32>
    %c0_3 = arith.constant 0 : index
    %c0_4 = arith.constant 0 : index
    %3 = vector.load %arg3[%c0_3, %c0_4] : memref<1x256xf32, #tpu.memory_space<vmem>>, vector<1x256xf32>
    %4 = vector.broadcast %3 : vector<1x256xf32> to vector<16x256xf32>
    %5 = arith.addf %2, %4 : vector<16x256xf32>
    %6 = arith.mulf %5, %5 : vector<16x256xf32>
    %cst_5 = arith.constant dense<0.000000e+00> : vector<16xf32>
    %7 = vector.multi_reduction <add>, %6, %cst_5 [1] : vector<16x256xf32> to vector<16xf32>
    %8 = vector.shape_cast %7 : vector<16xf32> to vector<16x1xf32>
    %cst_6 = arith.constant 1.000000e-24 : f32
    %9 = vector.broadcast %cst_6 : f32 to vector<16x1xf32>
    %10 = arith.maximumf %8, %9 : vector<16x1xf32>
    %11 = math.rsqrt %10 : vector<16x1xf32>
    %12 = vector.broadcast %11 : vector<16x1xf32> to vector<16x256xf32>
    %13 = arith.mulf %5, %12 : vector<16x256xf32>
    %c0_7 = arith.constant 0 : index
    %c0_8 = arith.constant 0 : index
    %14 = vector.load %arg4[%c0_7, %c0_8] : memref<16x256xf32, #tpu.memory_space<vmem>>, vector<16x256xf32>
    tpu.vector_store %arg4[%c0_7, %c0_8], %13 {strides = array<i32>} : memref<16x256xf32, #tpu.memory_space<vmem>>, vector<16x256xf32>,
    return
  }
  func.func @transform_0(%arg0: i32) -> (i32, i32) {
    %c0_i32 = arith.constant 0 : i32
    %c0_i32_0 = arith.constant 0 : i32
    return %arg0, %c0_i32 : i32, i32
  }
  func.func @transform_1(%arg0: i32) -> (i32, i32) {
    %c0_i32 = arith.constant 0 : i32
    %c0_i32_0 = arith.constant 0 : i32
    %c0_i32_1 = arith.constant 0 : i32
    return %c0_i32, %c0_i32_0 : i32, i32
  }
  func.func @transform_2(%arg0: i32) -> (i32, i32) {
    %c0_i32 = arith.constant 0 : i32
    %c0_i32_0 = arith.constant 0 : i32
    %c0_i32_1 = arith.constant 0 : i32
    return %c0_i32, %c0_i32_0 : i32, i32
  }
  func.func @transform_3(%arg0: i32) -> (i32, i32) {
    %c0_i32 = arith.constant 0 : i32
    %c0_i32_0 = arith.constant 0 : i32
    return %arg0, %c0_i32 : i32, i32
  }
}

</mosaic_0001>

<bundles_post_ra>
// kernel: tpu_custom_call.1
= control target key start
LH: loop header
LB: loop body
LE: loop exit
PB: predicated region body
PF: predicated region fallthrough
CT: control target
= control target key end

     0   :  { %8 = vsyncpa [#allocation3], 0  ;;  %s2036_s0 = inlined_call_operand.hbm [shape: bf16[16,1024], index: 0, kind: input, shape index: {}]   ;;  %s2037_s1 = inlined_call_operand.hbm [shape: bf16[1024,256], index: 1, kind: input, shape index: {}]   ;;  %s2038_s2 = inlined_call_operand.hbm [shape: f32[1,256], index: 2, kind: input, shape index: {}]   ;;  %s2039_s3 = inlined_call_operand.hbm [shape: f32[16,256], index: 3, kind: output, shape index: {}]  }
   0x1   :  { %9 = vsyncpa [#allocation6], 0  ;;  %s28_s14 = sshll.u32 %s2037_s1, 4  ;;  %s29_s14 = int_to_ptr.hbm [resolvable:$true] %s28_s14 }
   0x2   :  { %10 = vsyncpa [#allocation4], 0  ;;  %s1962_s15 = smov [#allocation5]   ;;  %s15_s19 = sshll.u32 %s2036_s0, 4  ;;  %s16_s19 = int_to_ptr.hbm [resolvable:$true] %s15_s19 }
   0x3   :  { %s30_s16 = sshll.u32 %s1962_s15, 4  ;;  %s1963_s20 = smov 128   ;;  %s31_s16 = int_to_ptr.vmem [resolvable:$true] %s30_s16 }
   0x4   :  { %s1964_s21 = smov 8   ;;  %s1965_s22 = smov [#allocation2]  }
   0x5   :  { %36 = dma.hbm_to_vmem [thread:$0]  %s29_s14, 16384, %s31_s16, [#allocation6], %s1963_s20, %s1963_s20, %s1964_s21  }
   0x6   :  { %s17_s23 = sshll.u32 %s1965_s22, 4  ;;  %s1966_s24 = smov 512   ;;  %s18_s23 = int_to_ptr.vmem [resolvable:$true] %s17_s23 }
   0x7   :  { %s1967_s25 = smov 32   ;;  %s42_s27 = sshll.u32 %s2038_s2, 4  ;;  %s43_s27 = int_to_ptr.hbm [resolvable:$true] %s42_s27 }
   0x8   :  { %23 = dma.hbm_to_vmem [thread:$0]  %s16_s19, 1024, %s18_s23, [#allocation3], %s1966_s24, %s1966_s24, %s1967_s25  }
   0x9   :  { %s1968_s28 = smov [#allocation7]  }
   0xa   :  { %s44_s29 = sshll.u32 %s1968_s28, 4  ;;  %s45_s29 = int_to_ptr.vmem [resolvable:$true] %s44_s29 }
   0xb   :  { %47 = dma.hbm_to_vmem [thread:$0]  %s43_s27, 32, %s45_s29, [#allocation6]  }
   0xc   :  { %1956 = dma.done.wait [#allocation3], 1024  }
   0xd   :  { %1957 = vsyncadd [#allocation3], 4294966272 }
   0xe   :  { %1958 = dma.done.wait [#allocation6], 16416  }
   0xf   :  { %1959 = vsyncadd [#allocation6], 4294950880  ;;  %v1256_v0 = vld [vmem:[#allocation5 + $0x70] sm:$0xf]  ;;  %v1733_v1 = vld [vmem:[#allocation5 + $0x74] sm:$0xf0] }
  0x10   :  { %v1320_v2 = vld [vmem:[#allocation5 + $0xf0] sm:$0xf]  ;;  %v1257_v3 = vor.u32 %v1733_v1, %v1256_v0  ;;  %v1749_v4 = vld [vmem:[#allocation5 + $0xf4] sm:$0xf0]  ;;  %v1248_v11 = vld [vmem:[#allocation5 + $0x60] sm:$0xf] }
  0x11   :  { %v1384_v5 = vld [vmem:[#allocation5 + $0x170] sm:$0xf]  ;;  %v1765_v6 = vld [vmem:[#allocation5 + $0x174] sm:$0xf0]  ;;  %v1321_v7 = vor.u32 %v1749_v4, %v1320_v2  ;;  %v1731_v13 = vld [vmem:[#allocation5 + $0x64] sm:$0xf0] }
  0x12   :  { %v1385_v8 = vor.u32 %v1765_v6, %v1384_v5  ;;  %v1448_v9 = vld [vmem:[#allocation5 + $0x1f0] sm:$0xf]  ;;  %v1781_v10 = vld [vmem:[#allocation5 + $0x1f4] sm:$0xf0]  ;;  %882 = vmatpush.bf16.msra.mxu0 %v1257_v3  ;;  %v1312_v14 = vld [vmem:[#allocation5 + $0xe0] sm:$0xf]  ;;  %v1249_v16 = vor.u32 %v1731_v13, %v1248_v11 }
  0x13   :  { %v1449_v12 = vor.u32 %v1781_v10, %v1448_v9  ;;  %v1747_v15 = vld [vmem:[#allocation5 + $0xe4] sm:$0xf0]  ;;  %896 = vmatpush.bf16.msra.mxu1 %v1321_v7  ;;  %v1376_v18 = vld [vmem:[#allocation5 + $0x160] sm:$0xf]  ;;  %v1240_v23 = vld [vmem:[#allocation5 + $0x50] sm:$0xf] }
  0x14   :  { %910 = vmatpush.bf16.msra.mxu2 %v1385_v8  ;;  %v1313_v17 = vor.u32 %v1747_v15, %v1312_v14  ;;  %v1763_v19 = vld [vmem:[#allocation5 + $0x164] sm:$0xf0]  ;;  %v1440_v20 = vld [vmem:[#allocation5 + $0x1e0] sm:$0xf]  ;;  %v1729_v24 = vld [vmem:[#allocation5 + $0x54] sm:$0xf0] }
  0x15   :  { %924 = vmatpush.bf16.msra.mxu3 %v1449_v12  ;;  %v1377_v21 = vor.u32 %v1763_v19, %v1376_v18  ;;  %v1779_v22 = vld [vmem:[#allocation5 + $0x1e4] sm:$0xf0]  ;;  %v1304_v26 = vld [vmem:[#allocation5 + $0xd0] sm:$0xf]  ;;  %v1745_v27 = vld [vmem:[#allocation5 + $0xd4] sm:$0xf0]  ;;  %v1241_v29 = vor.u32 %v1729_v24, %v1240_v23 }
  0x16   :  { %v1441_v25 = vor.u32 %v1779_v22, %v1440_v20  ;;  %v1368_v28 = vld [vmem:[#allocation5 + $0x150] sm:$0xf]  ;;  %883 = vmatpush.bf16.msra.mxu0 %v1249_v16  ;;  %v1761_v30 = vld [vmem:[#allocation5 + $0x154] sm:$0xf0]  ;;  %v1305_v33 = vor.u32 %v1745_v27, %v1304_v26  ;;  %v1232_v35 = vld [vmem:[#allocation5 + $0x40] sm:$0xf] }
  0x17   :  { %v1432_v31 = vld [vmem:[#allocation5 + $0x1d0] sm:$0xf]  ;;  %v1777_v32 = vld [vmem:[#allocation5 + $0x1d4] sm:$0xf0]  ;;  %897 = vmatpush.bf16.msra.mxu1 %v1313_v17  ;;  %v1369_v34 = vor.u32 %v1761_v30, %v1368_v28  ;;  %v1727_v36 = vld [vmem:[#allocation5 + $0x44] sm:$0xf0] }
  0x18   :  { %911 = vmatpush.bf16.msra.mxu2 %v1377_v21  ;;  %v1296_v37 = vld [vmem:[#allocation5 + $0xc0] sm:$0xf]  ;;  %v1433_v38 = vor.u32 %v1777_v32, %v1432_v31  ;;  %v1743_v39 = vld [vmem:[#allocation5 + $0xc4] sm:$0xf0]  ;;  %v1233_v44 = vor.u32 %v1727_v36, %v1232_v35  ;;  %v1224_v47 = vld [vmem:[#allocation5 + $0x30] sm:$0xf] }
  0x19   :  { %925 = vmatpush.bf16.msra.mxu3 %v1441_v25  ;;  %v1360_v40 = vld [vmem:[#allocation5 + $0x140] sm:$0xf]  ;;  %v1759_v41 = vld [vmem:[#allocation5 + $0x144] sm:$0xf0]  ;;  %v1297_v45 = vor.u32 %v1743_v39, %v1296_v37  ;;  %v1725_v48 = vld [vmem:[#allocation5 + $0x34] sm:$0xf0] }
  0x1a   :  { %v1424_v42 = vld [vmem:[#allocation5 + $0x1c0] sm:$0xf]  ;;  %v1775_v43 = vld [vmem:[#allocation5 + $0x1c4] sm:$0xf0]  ;;  %884 = vmatpush.bf16.msra.mxu0 %v1241_v29  ;;  %v1361_v46 = vor.u32 %v1759_v41, %v1360_v40  ;;  %v1288_v49 = vld [vmem:[#allocation5 + $0xb0] sm:$0xf]  ;;  %v1225_v56 = vor.u32 %v1725_v48, %v1224_v47 }
  0x1b   :  { %898 = vmatpush.bf16.msra.mxu1 %v1305_v33  ;;  %v1425_v50 = vor.u32 %v1775_v43, %v1424_v42  ;;  %v1741_v51 = vld [vmem:[#allocation5 + $0xb4] sm:$0xf0]  ;;  %v1352_v52 = vld [vmem:[#allocation5 + $0x130] sm:$0xf]  ;;  %v1216_v59 = vld [vmem:[#allocation5 + $0x20] sm:$0xf] }
  0x1c   :  { %912 = vmatpush.bf16.msra.mxu2 %v1369_v34  ;;  %v1757_v53 = vld [vmem:[#allocation5 + $0x134] sm:$0xf0]  ;;  %v1416_v54 = vld [vmem:[#allocation5 + $0x1b0] sm:$0xf]  ;;  %v1289_v57 = vor.u32 %v1741_v51, %v1288_v49  ;;  %v1723_v60 = vld [vmem:[#allocation5 + $0x24] sm:$0xf0] }
  0x1d   :  { %926 = vmatpush.bf16.msra.mxu3 %v1433_v38  ;;  %v1773_v55 = vld [vmem:[#allocation5 + $0x1b4] sm:$0xf0]  ;;  %v1353_v58 = vor.u32 %v1757_v53, %v1352_v52  ;;  %v1280_v61 = vld [vmem:[#allocation5 + $0xa0] sm:$0xf]  ;;  %v1739_v63 = vld [vmem:[#allocation5 + $0xa4] sm:$0xf0]  ;;  %v1217_v4 = vor.u32 %v1723_v60, %v1216_v59 }
  0x1e   :  { %885 = vmatpush.bf16.msra.mxu0 %v1233_v44  ;;  %v1417_v62 = vor.u32 %v1773_v55, %v1416_v54  ;;  %v1344_v0 = vld [vmem:[#allocation5 + $0x120] sm:$0xf]  ;;  %v1755_v1 = vld [vmem:[#allocation5 + $0x124] sm:$0xf0]  ;;  %v1281_v5 = vor.u32 %v1739_v63, %v1280_v61  ;;  %v1208_v7 = vld [vmem:[#allocation5 + $0x10] sm:$0xf] }
  0x1f   :  { %899 = vmatpush.bf16.msra.mxu1 %v1297_v45  ;;  %v1408_v2 = vld [vmem:[#allocation5 + $0x1a0] sm:$0xf]  ;;  %v1771_v3 = vld [vmem:[#allocation5 + $0x1a4] sm:$0xf0]  ;;  %v1345_v6 = vor.u32 %v1755_v1, %v1344_v0  ;;  %v1721_v8 = vld [vmem:[#allocation5 + $0x14] sm:$0xf0] }
  0x20   :  { %913 = vmatpush.bf16.msra.mxu2 %v1361_v46  ;;  %v1272_v9 = vld [vmem:[#allocation5 + $0x90] sm:$0xf]  ;;  %v1409_v10 = vor.u32 %v1771_v3, %v1408_v2  ;;  %v1737_v11 = vld [vmem:[#allocation5 + $0x94] sm:$0xf0]  ;;  %v1209_v16 = vor.u32 %v1721_v8, %v1208_v7  ;;  %v1200_v17 = vld [vmem:[#allocation5] sm:$0xf] }
  0x21   :  { %927 = vmatpush.bf16.msra.mxu3 %v1425_v50  ;;  %v1336_v12 = vld [vmem:[#allocation5 + $0x110] sm:$0xf]  ;;  %v1753_v13 = vld [vmem:[#allocation5 + $0x114] sm:$0xf0]  ;;  %v1719_v18 = vld [vmem:[#allocation5 + $0x4] sm:$0xf0]  ;;  %v1273_v19 = vor.u32 %v1737_v11, %v1272_v9 }
  0x22   :  { %886 = vmatpush.bf16.msra.mxu0 %v1225_v56  ;;  %v1400_v14 = vld [vmem:[#allocation5 + $0x190] sm:$0xf]  ;;  %v1769_v15 = vld [vmem:[#allocation5 + $0x194] sm:$0xf0]  ;;  %v1337_v20 = vor.u32 %v1753_v13, %v1336_v12  ;;  %v1264_v21 = vld [vmem:[#allocation5 + $0x80] sm:$0xf]  ;;  %v1201_v31 = vor.u32 %v1719_v18, %v1200_v17 }
  0x23   :  { %900 = vmatpush.bf16.msra.mxu1 %v1289_v57  ;;  %v1735_v22 = vld [vmem:[#allocation5 + $0x84] sm:$0xf0]  ;;  %v1328_v23 = vld [vmem:[#allocation5 + $0x100] sm:$0xf]  ;;  %v1401_v24 = vor.u32 %v1769_v15, %v1400_v14  ;;  %v1512_v28 = vld [vmem:[#allocation5 + $0x270] sm:$0xf] }
  0x24   :  { %914 = vmatpush.bf16.msra.mxu2 %v1353_v58  ;;  %v1751_v25 = vld [vmem:[#allocation5 + $0x104] sm:$0xf0]  ;;  %v1392_v26 = vld [vmem:[#allocation5 + $0x180] sm:$0xf]  ;;  %v1797_v29 = vld [vmem:[#allocation5 + $0x274] sm:$0xf0]  ;;  %v1265_v35 = vor.u32 %v1735_v22, %v1264_v21 }
  0x25   :  { %928 = vmatpush.bf16.msra.mxu3 %v1417_v62  ;;  %v1767_v27 = vld [vmem:[#allocation5 + $0x184] sm:$0xf0]  ;;  %v1576_v30 = vld [vmem:[#allocation5 + $0x2f0] sm:$0xf]  ;;  %v1813_v32 = vld [vmem:[#allocation5 + $0x2f4] sm:$0xf0]  ;;  %v1329_v36 = vor.u32 %v1751_v25, %v1328_v23  ;;  %v1513_v40 = vor.u32 %v1797_v29, %v1512_v28 }
  0x26   :  { %887 = vmatpush.bf16.msra.mxu0 %v1217_v4  ;;  %v1640_v33 = vld [vmem:[#allocation5 + $0x370] sm:$0xf]  ;;  %v1829_v34 = vld [vmem:[#allocation5 + $0x374] sm:$0xf0]  ;;  %v1393_v39 = vor.u32 %v1767_v27, %v1392_v26  ;;  %v1504_v41 = vld [vmem:[#allocation5 + $0x260] sm:$0xf]  ;;  %v1577_v43 = vor.u32 %v1813_v32, %v1576_v30 }
  0x27   :  { %901 = vmatpush.bf16.msra.mxu1 %v1281_v5  ;;  %v1704_v37 = vld [vmem:[#allocation5 + $0x3f0] sm:$0xf]  ;;  %v1845_v38 = vld [vmem:[#allocation5 + $0x3f4] sm:$0xf0]  ;;  %v1795_v42 = vld [vmem:[#allocation5 + $0x264] sm:$0xf0]  ;;  %v1641_v44 = vor.u32 %v1829_v34, %v1640_v33 }
  0x28   :  { %915 = vmatpush.bf16.msra.mxu2 %v1345_v6  ;;  %v1568_v45 = vld [vmem:[#allocation5 + $0x2e0] sm:$0xf]  ;;  %v1811_v46 = vld [vmem:[#allocation5 + $0x2e4] sm:$0xf0]  ;;  %v1705_v48 = vor.u32 %v1845_v38, %v1704_v37  ;;  %v1505_v55 = vor.u32 %v1795_v42, %v1504_v41  ;;  %v1496_v56 = vld [vmem:[#allocation5 + $0x250] sm:$0xf] }
  0x29   :  { %929 = vmatpush.bf16.msra.mxu3 %v1409_v10  ;;  %v1632_v47 = vld [vmem:[#allocation5 + $0x360] sm:$0xf]  ;;  %v1827_v49 = vld [vmem:[#allocation5 + $0x364] sm:$0xf0]  ;;  %v1793_v57 = vld [vmem:[#allocation5 + $0x254] sm:$0xf0]  ;;  %v1569_v60 = vor.u32 %v1811_v46, %v1568_v45 }
  0x2a   :  { %888 = vmatpush.bf16.msra.mxu0 %v1209_v16  ;;  %v1696_v50 = vld [vmem:[#allocation5 + $0x3e0] sm:$0xf]  ;;  %v1843_v51 = vld [vmem:[#allocation5 + $0x3e4] sm:$0xf0]  ;;  %v1633_v61 = vor.u32 %v1827_v49, %v1632_v47  ;;  %v1560_v62 = vld [vmem:[#allocation5 + $0x2d0] sm:$0xf]  ;;  %v1497_v9 = vor.u32 %v1793_v57, %v1496_v56 }
  0x2b   :  { %902 = vmatpush.bf16.msra.mxu1 %v1273_v19  ;;  %v1168_v52 = vld [vmem:[#allocation2] sm:$0xf]  ;;  %v1176_v54 = vld [vmem:[#allocation2 + $0x8] sm:$0xf]  ;;  %v1809_v63 = vld [vmem:[#allocation5 + $0x2d4] sm:$0xf0]  ;;  %v1697_v2 = vor.u32 %v1843_v51, %v1696_v50 }
  0x2c   :  { %916 = vmatpush.bf16.msra.mxu2 %v1337_v20  ;;  %v1714_v53 = vld [vmem:[#allocation2 + $0x1c] sm:$0xf0]  ;;  %v1715_v59 = vld [vmem:[#allocation2 + $0x24] sm:$0xf0]  ;;  %v1624_v0 = vld [vmem:[#allocation5 + $0x350] sm:$0xf]  ;;  %v1561_v12 = vor.u32 %v1809_v63, %v1560_v62 }
  0x2d   :  { %930 = vmatpush.bf16.msra.mxu3 %v1401_v24  ;;  %v2001_v58 = vor.u32 %v1714_v53, %v1168_v52  ;;  %v2003_v1 = vor.u32 %v1715_v59, %v1176_v54  ;;  %v1825_v3 = vld [vmem:[#allocation5 + $0x354] sm:$0xf0]  ;;  %v1688_v4 = vld [vmem:[#allocation5 + $0x3d0] sm:$0xf]  ;;  %v1710_v6 = vld [vmem:[#allocation2 + $0x4] sm:$0xf] }
  0x2e   :  { %889 = vmatpush.bf16.msra.mxu0 %v1201_v31  ;;  %v1841_v5 = vld [vmem:[#allocation5 + $0x3d4] sm:$0xf0]  ;;  %v1170_v7 = vld [vmem:[#allocation2 + $0x20] sm:$0xf0]  ;;  %v1711_v8 = vld [vmem:[#allocation2 + $0xc] sm:$0xf]  ;;  %v1625_v13 = vor.u32 %v1825_v3, %v1624_v0 }
  0x2f   :  { %903 = vmatpush.bf16.msra.mxu1 %v1265_v35  ;;  %v2007_v10 = vor.u32 %v1710_v6, %v1170_v7  ;;  %v1178_v11 = vld [vmem:[#allocation2 + $0x28] sm:$0xf0]  ;;  %v1488_v14 = vld [vmem:[#allocation5 + $0x240] sm:$0xf]  ;;  %v1791_v15 = vld [vmem:[#allocation5 + $0x244] sm:$0xf0]  ;;  %v1689_v18 = vor.u32 %v1841_v5, %v1688_v4 }
  0x30   :  { %917 = vmatpush.bf16.msra.mxu2 %v1329_v36  ;;  %v1552_v16 = vld [vmem:[#allocation5 + $0x2c0] sm:$0xf]  ;;  %v2009_v17 = vor.u32 %v1711_v8, %v1178_v11  ;;  %v1807_v19 = vld [vmem:[#allocation5 + $0x2c4] sm:$0xf0]  ;;  %v1489_v24 = vor.u32 %v1791_v15, %v1488_v14  ;;  %v1480_v27 = vld [vmem:[#allocation5 + $0x230] sm:$0xf] }
  0x31   :  { %931 = vmatpush.bf16.msra.mxu3 %v1393_v39  ;;  %890 = vmatmul.bf16.vlgmr.msra.gmra.mxu0 %v2001_v58  ;;  %v1616_v20 = vld [vmem:[#allocation5 + $0x340] sm:$0xf]  ;;  %v1823_v21 = vld [vmem:[#allocation5 + $0x344] sm:$0xf0]  ;;  %v1553_v25 = vor.u32 %v1807_v19, %v1552_v16  ;;  %v1789_v28 = vld [vmem:[#allocation5 + $0x234] sm:$0xf0] }
  0x32   :  { %938 = vmatpush.bf16.msrb.mxu0 %v1513_v40  ;;  %904 = vmatmul.bf16.vlgmr.msra.gmra.mxu1 %v2007_v10  ;;  %v1680_v22 = vld [vmem:[#allocation5 + $0x3c0] sm:$0xf]  ;;  %v1839_v23 = vld [vmem:[#allocation5 + $0x3c4] sm:$0xf0]  ;;  %v1617_v26 = vor.u32 %v1823_v21, %v1616_v20  ;;  %v1544_v29 = vld [vmem:[#allocation5 + $0x2b0] sm:$0xf]  ;;  %v1481_v36 = vor.u32 %v1789_v28, %v1480_v27 }
  0x33   :  { %952 = vmatpush.bf16.msrb.mxu1 %v1577_v43  ;;  %918 = vmatmul.bf16.vlgmr.msra.gmra.mxu2 %v2003_v1  ;;  %v1681_v30 = vor.u32 %v1839_v23, %v1680_v22  ;;  %v1805_v31 = vld [vmem:[#allocation5 + $0x2b4] sm:$0xf0]  ;;  %v1608_v32 = vld [vmem:[#allocation5 + $0x330] sm:$0xf]  ;;  %v1472_v39 = vld [vmem:[#allocation5 + $0x220] sm:$0xf] }
  0x34   :  { %966 = vmatpush.bf16.msrb.mxu2 %v1641_v44  ;;  %932 = vmatmul.bf16.vlgmr.msra.gmra.mxu3 %v2009_v17  ;;  %v1821_v33 = vld [vmem:[#allocation5 + $0x334] sm:$0xf0]  ;;  %v1672_v34 = vld [vmem:[#allocation5 + $0x3b0] sm:$0xf]  ;;  %v1545_v37 = vor.u32 %v1805_v31, %v1544_v29  ;;  %v1787_v40 = vld [vmem:[#allocation5 + $0x224] sm:$0xf0] }
  0x35   :  { %980 = vmatpush.bf16.msrb.mxu3 %v1705_v48  ;;  %v1837_v35 = vld [vmem:[#allocation5 + $0x3b4] sm:$0xf0]  ;;  %v1609_v38 = vor.u32 %v1821_v33, %v1608_v32  ;;  %v1536_v41 = vld [vmem:[#allocation5 + $0x2a0] sm:$0xf]  ;;  %v1803_v43 = vld [vmem:[#allocation5 + $0x2a4] sm:$0xf0]  ;;  %v1473_v48 = vor.u32 %v1787_v40, %v1472_v39 }
  0x36   :  { %939 = vmatpush.bf16.msrb.mxu0 %v1505_v55  ;;  %v1673_v42 = vor.u32 %v1837_v35, %v1672_v34  ;;  %v1600_v44 = vld [vmem:[#allocation5 + $0x320] sm:$0xf]  ;;  %v1819_v45 = vld [vmem:[#allocation5 + $0x324] sm:$0xf0]  ;;  %v1464_v49 = vld [vmem:[#allocation5 + $0x210] sm:$0xf]  ;;  %v1537_v50 = vor.u32 %v1803_v43, %v1536_v41 }
  0x37   :  { %953 = vmatpush.bf16.msrb.mxu1 %v1569_v60  ;;  %v1664_v46 = vld [vmem:[#allocation5 + $0x3a0] sm:$0xf]  ;;  %v1835_v47 = vld [vmem:[#allocation5 + $0x3a4] sm:$0xf0]  ;;  %v1601_v51 = vor.u32 %v1819_v45, %v1600_v44  ;;  %v1785_v52 = vld [vmem:[#allocation5 + $0x214] sm:$0xf0] }
  0x38   :  { %967 = vmatpush.bf16.msrb.mxu2 %v1633_v61  ;;  %v1528_v53 = vld [vmem:[#allocation5 + $0x290] sm:$0xf]  ;;  %v1801_v54 = vld [vmem:[#allocation5 + $0x294] sm:$0xf0]  ;;  %v1665_v55 = vor.u32 %v1835_v47, %v1664_v46  ;;  %v1456_v61 = vld [vmem:[#allocation5 + $0x200] sm:$0xf]  ;;  %v1465_v63 = vor.u32 %v1785_v52, %v1464_v49 }
  0x39   :  { %981 = vmatpush.bf16.msrb.mxu3 %v1697_v2  ;;  %v1592_v56 = vld [vmem:[#allocation5 + $0x310] sm:$0xf]  ;;  %v1817_v57 = vld [vmem:[#allocation5 + $0x314] sm:$0xf0]  ;;  %v1783_v62 = vld [vmem:[#allocation5 + $0x204] sm:$0xf0]  ;;  %v1529_v5 = vor.u32 %v1801_v54, %v1528_v53 }
  0x3a   :  { %940 = vmatpush.bf16.msrb.mxu0 %v1497_v9  ;;  %v1656_v59 = vld [vmem:[#allocation5 + $0x390] sm:$0xf]  ;;  %v1833_v60 = vld [vmem:[#allocation5 + $0x394] sm:$0xf0]  ;;  %v1520_v0 = vld [vmem:[#allocation5 + $0x280] sm:$0xf]  ;;  %v1593_v6 = vor.u32 %v1817_v57, %v1592_v56  ;;  %v1457_v19 = vor.u32 %v1783_v62, %v1456_v61 }
  0x3b   :  { %954 = vmatpush.bf16.msrb.mxu1 %v1561_v12  ;;  %v1799_v2 = vld [vmem:[#allocation5 + $0x284] sm:$0xf0]  ;;  %v1584_v3 = vld [vmem:[#allocation5 + $0x300] sm:$0xf]  ;;  %v1732_v9 = vld [vmem:[#allocation5 + $0x74] sm:$0xf]  ;;  %v1657_v11 = vor.u32 %v1833_v60, %v1656_v59 }
  0x3c   :  { %968 = vmatpush.bf16.msrb.mxu2 %v1625_v13  ;;  %v1815_v4 = vld [vmem:[#allocation5 + $0x304] sm:$0xf0]  ;;  %v1648_v7 = vld [vmem:[#allocation5 + $0x380] sm:$0xf]  ;;  %v1258_v12 = vld [vmem:[#allocation5 + $0x78] sm:$0xf0]  ;;  %v1521_v23 = vor.u32 %v1799_v2, %v1520_v0 }
  0x3d   :  { %982 = vmatpush.bf16.msrb.mxu3 %v1689_v18  ;;  %v1831_v8 = vld [vmem:[#allocation5 + $0x384] sm:$0xf0]  ;;  %v1748_v13 = vld [vmem:[#allocation5 + $0xf4] sm:$0xf]  ;;  %v1322_v14 = vld [vmem:[#allocation5 + $0xf8] sm:$0xf0]  ;;  %v1261_v29 = vor.u32 %v1732_v9, %v1258_v12 }
  0x3e   :  { %941 = vmatpush.bf16.msrb.mxu0 %v1489_v24  ;;  %v1764_v15 = vld [vmem:[#allocation5 + $0x174] sm:$0xf]  ;;  %v1386_v16 = vld [vmem:[#allocation5 + $0x178] sm:$0xf0]  ;;  %v1184_v21 = vld [vmem:[#allocation2 + $0x10] sm:$0xf]  ;;  %v1585_v24 = vor.u32 %v1815_v4, %v1584_v3  ;;  %v1649_v28 = vor.u32 %v1831_v8, %v1648_v7  ;;  %v1325_v33 = vor.u32 %v1748_v13, %v1322_v14 }
  0x3f   :  { %955 = vmatpush.bf16.msrb.mxu1 %v1553_v25  ;;  %v1780_v18 = vld [vmem:[#allocation5 + $0x1f4] sm:$0xf]  ;;  %v1450_v20 = vld [vmem:[#allocation5 + $0x1f8] sm:$0xf0]  ;;  %v1716_v22 = vld [vmem:[#allocation2 + $0x2c] sm:$0xf0]  ;;  %v1389_v34 = vor.u32 %v1764_v15, %v1386_v16 }
  0x40   :  { %969 = vmatpush.bf16.msrb.mxu2 %v1617_v26  ;;  %v1192_v25 = vld [vmem:[#allocation2 + $0x18] sm:$0xf]  ;;  %v1712_v27 = vld [vmem:[#allocation2 + $0x14] sm:$0xf]  ;;  %v1713_v31 = vld [vmem:[#allocation2 + $0x1c] sm:$0xf]  ;;  %v2013_v39 = vor.u32 %v1716_v22, %v1184_v21 }
  0x41   :  { %983 = vmatpush.bf16.msrb.mxu3 %v1681_v30  ;;  %v1717_v26 = vld [vmem:[#allocation2 + $0x34] sm:$0xf0]  ;;  %v1186_v30 = vld [vmem:[#allocation2 + $0x30] sm:$0xf0]  ;;  %v1194_v32 = vld [vmem:[#allocation2 + $0x38] sm:$0xf0] }
  0x42   :  { %942 = vmatpush.bf16.msrb.mxu0 %v1481_v36  ;;  %v1730_v35 = vld [vmem:[#allocation5 + $0x64] sm:$0xf]  ;;  %v1250_v36 = vld [vmem:[#allocation5 + $0x68] sm:$0xf0]  ;;  %v2015_v43 = vor.u32 %v1717_v26, %v1192_v25  ;;  %v2017_v44 = vor.u32 %v1712_v27, %v1186_v30  ;;  %v2019_v47 = vor.u32 %v1713_v31, %v1194_v32  ;;  %v1242_v52 = vld [vmem:[#allocation5 + $0x58] sm:$0xf0] }
  0x43   :  { %956 = vmatpush.bf16.msrb.mxu1 %v1545_v37  ;;  %v1746_v37 = vld [vmem:[#allocation5 + $0xe4] sm:$0xf]  ;;  %v1314_v40 = vld [vmem:[#allocation5 + $0xe8] sm:$0xf0]  ;;  %v1744_v53 = vld [vmem:[#allocation5 + $0xd4] sm:$0xf] }
  0x44   :  { %970 = vmatpush.bf16.msrb.mxu2 %v1609_v38  ;;  %v1453_v38 = vor.u32 %v1780_v18, %v1450_v20  ;;  %v1762_v41 = vld [vmem:[#allocation5 + $0x164] sm:$0xf]  ;;  %v1442_v46 = vld [vmem:[#allocation5 + $0x1e8] sm:$0xf0]  ;;  %v1317_v49 = vor.u32 %v1746_v37, %v1314_v40  ;;  %v1760_v56 = vld [vmem:[#allocation5 + $0x154] sm:$0xf] }
  0x45   :  { %984 = vmatpush.bf16.msrb.mxu3 %v1673_v42  ;;  %v1378_v42 = vld [vmem:[#allocation5 + $0x168] sm:$0xf0]  ;;  %v1778_v45 = vld [vmem:[#allocation5 + $0x1e4] sm:$0xf]  ;;  %v1370_v57 = vld [vmem:[#allocation5 + $0x158] sm:$0xf0] }
  0x46   :  { %943 = vmatpush.bf16.msrb.mxu0 %v1473_v48  ;;  %v1253_v48 = vor.u32 %v1730_v35, %v1250_v36  ;;  %v1445_v54 = vor.u32 %v1778_v45, %v1442_v46  ;;  %v1776_v59 = vld [vmem:[#allocation5 + $0x1d4] sm:$0xf]  ;;  %v1434_v60 = vld [vmem:[#allocation5 + $0x1d8] sm:$0xf0]  ;;  %v1726_v0 = vld [vmem:[#allocation5 + $0x44] sm:$0xf] }
  0x47   :  { %957 = vmatpush.bf16.msrb.mxu1 %v1537_v50  ;;  %v1381_v50 = vor.u32 %v1762_v41, %v1378_v42  ;;  %v1234_v2 = vld [vmem:[#allocation5 + $0x48] sm:$0xf0]  ;;  %v1742_v3 = vld [vmem:[#allocation5 + $0xc4] sm:$0xf]  ;;  %v1437_v4 = vor.u32 %v1776_v59, %v1434_v60  ;;  %v1724_v14 = vld [vmem:[#allocation5 + $0x34] sm:$0xf] }
  0x48   :  { %971 = vmatpush.bf16.msrb.mxu2 %v1601_v51  ;;  %v1728_v51 = vld [vmem:[#allocation5 + $0x54] sm:$0xf]  ;;  %v1362_v7 = vld [vmem:[#allocation5 + $0x148] sm:$0xf0]  ;;  %v1774_v8 = vld [vmem:[#allocation5 + $0x1c4] sm:$0xf] }
  0x49   :  { %985 = vmatpush.bf16.msrb.mxu3 %v1665_v55  ;;  %v1306_v55 = vld [vmem:[#allocation5 + $0xd8] sm:$0xf0]  ;;  %v1245_v61 = vor.u32 %v1728_v51, %v1242_v52  ;;  %v1426_v9 = vld [vmem:[#allocation5 + $0x1c8] sm:$0xf0]  ;;  %v1740_v16 = vld [vmem:[#allocation5 + $0xb4] sm:$0xf] }
  0x4a   :  { %944 = vmatpush.bf16.msrb.mxu0 %v1465_v63  ;;  %v1309_v62 = vor.u32 %v1744_v53, %v1306_v55  ;;  %v1373_v63 = vor.u32 %v1760_v56, %v1370_v57  ;;  %v1226_v15 = vld [vmem:[#allocation5 + $0x38] sm:$0xf0]  ;;  %v1429_v18 = vor.u32 %v1774_v8, %v1426_v9  ;;  %v1756_v20 = vld [vmem:[#allocation5 + $0x134] sm:$0xf]  ;;  %v1722_v27 = vld [vmem:[#allocation5 + $0x24] sm:$0xf] }
  0x4b   :  { %958 = vmatpush.bf16.msrb.mxu1 %v1529_v5  ;;  %v1298_v5 = vld [vmem:[#allocation5 + $0xc8] sm:$0xf0]  ;;  %v1354_v21 = vld [vmem:[#allocation5 + $0x138] sm:$0xf0]  ;;  %v1772_v22 = vld [vmem:[#allocation5 + $0x1b4] sm:$0xf] }
  0x4c   :  { %972 = vmatpush.bf16.msrb.mxu2 %v1593_v6  ;;  %v1758_v6 = vld [vmem:[#allocation5 + $0x144] sm:$0xf]  ;;  %v1301_v12 = vor.u32 %v1742_v3, %v1298_v5  ;;  %v1357_v26 = vor.u32 %v1756_v20, %v1354_v21  ;;  %v1282_v31 = vld [vmem:[#allocation5 + $0xa8] sm:$0xf0]  ;;  %v1720_v40 = vld [vmem:[#allocation5 + $0x14] sm:$0xf] }
  0x4d   :  { %986 = vmatpush.bf16.msrb.mxu3 %v1657_v11  ;;  %v1237_v11 = vor.u32 %v1726_v0, %v1234_v2  ;;  %v1365_v13 = vor.u32 %v1758_v6, %v1362_v7  ;;  %v1754_v32 = vld [vmem:[#allocation5 + $0x124] sm:$0xf]  ;;  %v1410_v35 = vld [vmem:[#allocation5 + $0x1a8] sm:$0xf0]  ;;  %v1210_v41 = vld [vmem:[#allocation5 + $0x18] sm:$0xf0] }
  0x4e   :  { %945 = vmatpush.bf16.msrb.mxu0 %v1457_v19  ;;  %v1290_v19 = vld [vmem:[#allocation5 + $0xb8] sm:$0xf0]  ;;  %v1736_v42 = vld [vmem:[#allocation5 + $0x94] sm:$0xf]  ;;  %v1213_v52 = vor.u32 %v1720_v40, %v1210_v41  ;;  %v1718_v53 = vld [vmem:[#allocation5 + $0x4] sm:$0xf] }
  0x4f   :  { %959 = vmatpush.bf16.msrb.mxu1 %v1521_v23  ;;  %v1418_v23 = vld [vmem:[#allocation5 + $0x1b8] sm:$0xf0]  ;;  %v1293_v25 = vor.u32 %v1740_v16, %v1290_v19  ;;  %v1734_v57 = vld [vmem:[#allocation5 + $0x84] sm:$0xf]  ;;  %v1266_v59 = vld [vmem:[#allocation5 + $0x88] sm:$0xf0] }
  0x50   :  { %973 = vmatpush.bf16.msrb.mxu2 %v1585_v24  ;;  %v1229_v24 = vor.u32 %v1724_v14, %v1226_v15  ;;  %v1421_v30 = vor.u32 %v1772_v22, %v1418_v23  ;;  %v1274_v46 = vld [vmem:[#allocation5 + $0x98] sm:$0xf0]  ;;  %v1750_v60 = vld [vmem:[#allocation5 + $0x104] sm:$0xf]  ;;  %v1394_v0 = vld [vmem:[#allocation5 + $0x188] sm:$0xf0]  ;;  %v1269_v9 = vor.u32 %v1734_v57, %v1266_v59 }
  0x51   :  { %987 = vmatpush.bf16.msrb.mxu3 %v1649_v28  ;;  %946 = vmatmul.bf16.vlgmr.msrb.gmra.mxu0 %v2013_v39  ;;  %v1218_v28 = vld [vmem:[#allocation5 + $0x28] sm:$0xf0]  ;;  %v1402_v51 = vld [vmem:[#allocation5 + $0x198] sm:$0xf0]  ;;  %v1277_v55 = vor.u32 %v1736_v42, %v1274_v46  ;;  %v1796_v2 = vld [vmem:[#allocation5 + $0x274] sm:$0xf] }
  0x52   :  { %994 = vmatpush.bf16.msra.mxu0 %v1261_v29  ;;  %960 = vmatmul.bf16.vlgmr.msrb.gmra.mxu1 %v2017_v44  ;;  %v1738_v29 = vld [vmem:[#allocation5 + $0xa4] sm:$0xf]  ;;  %v1221_v36 = vor.u32 %v1722_v27, %v1218_v28  ;;  %v1514_v3 = vld [vmem:[#allocation5 + $0x278] sm:$0xf0]  ;;  %v1828_v7 = vld [vmem:[#allocation5 + $0x374] sm:$0xf] }
  0x53   :  { %1008 = vmatpush.bf16.msra.mxu1 %v1325_v33  ;;  %974 = vmatmul.bf16.vlgmr.msrb.gmra.mxu2 %v2015_v43  ;;  %v1346_v33 = vld [vmem:[#allocation5 + $0x128] sm:$0xf0]  ;;  %v1285_v37 = vor.u32 %v1738_v29, %v1282_v31  ;;  %v1578_v6 = vld [vmem:[#allocation5 + $0x2f8] sm:$0xf0]  ;;  %v1517_v15 = vor.u32 %v1796_v2, %v1514_v3  ;;  %v1794_v19 = vld [vmem:[#allocation5 + $0x264] sm:$0xf] }
  0x54   :  { %1022 = vmatpush.bf16.msra.mxu2 %v1389_v34  ;;  %988 = vmatmul.bf16.vlgmr.msrb.gmra.mxu3 %v2019_v47  ;;  %v1770_v34 = vld [vmem:[#allocation5 + $0x1a4] sm:$0xf]  ;;  %v1642_v8 = vld [vmem:[#allocation5 + $0x378] sm:$0xf0]  ;;  %v1506_v20 = vld [vmem:[#allocation5 + $0x268] sm:$0xf0] }
  0x55   :  { %1036 = vmatpush.bf16.msra.mxu3 %v1453_v38  ;;  %v1349_v38 = vor.u32 %v1754_v32, %v1346_v33  ;;  %v1413_v45 = vor.u32 %v1770_v34, %v1410_v35  ;;  %v1810_v21 = vld [vmem:[#allocation5 + $0x2e4] sm:$0xf]  ;;  %v1570_v23 = vld [vmem:[#allocation5 + $0x2e8] sm:$0xf0]  ;;  %v1509_v28 = vor.u32 %v1794_v19, %v1506_v20  ;;  %v1792_v31 = vld [vmem:[#allocation5 + $0x254] sm:$0xf] }
  0x56   :  { %995 = vmatpush.bf16.msra.mxu0 %v1253_v48  ;;  %v1752_v48 = vld [vmem:[#allocation5 + $0x114] sm:$0xf]  ;;  %v1698_v27 = vld [vmem:[#allocation5 + $0x3e8] sm:$0xf0]  ;;  %v1573_v29 = vor.u32 %v1810_v21, %v1570_v23  ;;  %v1498_v32 = vld [vmem:[#allocation5 + $0x258] sm:$0xf0] }
  0x57   :  { %1009 = vmatpush.bf16.msra.mxu1 %v1317_v49  ;;  %v1338_v49 = vld [vmem:[#allocation5 + $0x118] sm:$0xf0]  ;;  %v1808_v33 = vld [vmem:[#allocation5 + $0x2d4] sm:$0xf]  ;;  %v1501_v41 = vor.u32 %v1792_v31, %v1498_v32  ;;  %v1790_v46 = vld [vmem:[#allocation5 + $0x244] sm:$0xf] }
  0x58   :  { %1023 = vmatpush.bf16.msra.mxu2 %v1381_v50  ;;  %v1768_v50 = vld [vmem:[#allocation5 + $0x194] sm:$0xf]  ;;  %v1341_v56 = vor.u32 %v1752_v48, %v1338_v49  ;;  %v1562_v35 = vld [vmem:[#allocation5 + $0x2d8] sm:$0xf0]  ;;  %v1490_v48 = vld [vmem:[#allocation5 + $0x248] sm:$0xf0] }
  0x59   :  { %1037 = vmatpush.bf16.msra.mxu3 %v1445_v54  ;;  %v1202_v54 = vld [vmem:[#allocation5 + $0x8] sm:$0xf0]  ;;  %v1690_v40 = vld [vmem:[#allocation5 + $0x3d8] sm:$0xf0]  ;;  %v1565_v42 = vor.u32 %v1808_v33, %v1562_v35  ;;  %v1804_v57 = vld [vmem:[#allocation5 + $0x2b4] sm:$0xf] }
  0x5a   :  { %996 = vmatpush.bf16.msra.mxu0 %v1245_v61  ;;  %v1405_v61 = vor.u32 %v1768_v50, %v1402_v51  ;;  %v1205_v5 = vor.u32 %v1718_v53, %v1202_v54  ;;  %v1554_v50 = vld [vmem:[#allocation5 + $0x2c8] sm:$0xf0]  ;;  %v1822_v51 = vld [vmem:[#allocation5 + $0x344] sm:$0xf]  ;;  %v1784_v19 = vld [vmem:[#allocation5 + $0x214] sm:$0xf] }
  0x5b   :  { %1010 = vmatpush.bf16.msra.mxu1 %v1309_v62  ;;  %v1330_v62 = vld [vmem:[#allocation5 + $0x108] sm:$0xf0]  ;;  %v1838_v53 = vld [vmem:[#allocation5 + $0x3c4] sm:$0xf]  ;;  %v1466_v20 = vld [vmem:[#allocation5 + $0x218] sm:$0xf0] }
  0x5c   :  { %1024 = vmatpush.bf16.msra.mxu2 %v1373_v63  ;;  %v1766_v63 = vld [vmem:[#allocation5 + $0x184] sm:$0xf]  ;;  %v1800_v21 = vld [vmem:[#allocation5 + $0x294] sm:$0xf]  ;;  %v1530_v23 = vld [vmem:[#allocation5 + $0x298] sm:$0xf0] }
  0x5d   :  { %1038 = vmatpush.bf16.msra.mxu3 %v1437_v4  ;;  %v1812_v4 = vld [vmem:[#allocation5 + $0x2f4] sm:$0xf]  ;;  %v1397_v14 = vor.u32 %v1766_v63, %v1394_v0  ;;  %v1674_v0 = vld [vmem:[#allocation5 + $0x3b8] sm:$0xf0]  ;;  %v1782_v31 = vld [vmem:[#allocation5 + $0x204] sm:$0xf] }
  0x5e   :  { %997 = vmatpush.bf16.msra.mxu0 %v1237_v11  ;;  %v1333_v11 = vor.u32 %v1750_v60, %v1330_v62  ;;  %v1581_v16 = vor.u32 %v1812_v4, %v1578_v6  ;;  %v1546_v60 = vld [vmem:[#allocation5 + $0x2b8] sm:$0xf0]  ;;  %v1836_v63 = vld [vmem:[#allocation5 + $0x3b4] sm:$0xf]  ;;  %v1474_v6 = vld [vmem:[#allocation5 + $0x228] sm:$0xf0] }
  0x5f   :  { %1011 = vmatpush.bf16.msra.mxu1 %v1301_v12  ;;  %v1844_v12 = vld [vmem:[#allocation5 + $0x3f4] sm:$0xf]  ;;  %v1610_v62 = vld [vmem:[#allocation5 + $0x338] sm:$0xf0]  ;;  %v1549_v3 = vor.u32 %v1804_v57, %v1546_v60  ;;  %v1458_v32 = vld [vmem:[#allocation5 + $0x208] sm:$0xf0] }
  0x60   :  { %1025 = vmatpush.bf16.msra.mxu2 %v1365_v13  ;;  %v1706_v13 = vld [vmem:[#allocation5 + $0x3f8] sm:$0xf0]  ;;  %v1798_v33 = vld [vmem:[#allocation5 + $0x284] sm:$0xf]  ;;  %v1522_v35 = vld [vmem:[#allocation5 + $0x288] sm:$0xf0] }
  0x61   :  { %1039 = vmatpush.bf16.msra.mxu3 %v1429_v18  ;;  %v1645_v18 = vor.u32 %v1828_v7, %v1642_v8  ;;  %v1709_v22 = vor.u32 %v1844_v12, %v1706_v13  ;;  %v1802_v7 = vld [vmem:[#allocation5 + $0x2a4] sm:$0xf]  ;;  %v1677_v8 = vor.u32 %v1836_v63, %v1674_v0  ;;  %v1602_v12 = vld [vmem:[#allocation5 + $0x328] sm:$0xf0]  ;;  %s1969_s0 = smov [#allocation8]   ;;  %s1152_s5 = sshll.u32 %s2039_s3, 4  ;;  %s1153_s5 = int_to_ptr.hbm [resolvable:$true] %s1152_s5 }
  0x62   :  { %998 = vmatpush.bf16.msra.mxu0 %v1229_v24  ;;  %v1826_v24 = vld [vmem:[#allocation5 + $0x364] sm:$0xf]  ;;  %s1150_s2 = sshll.u32 %s1969_s0, 4  ;;  %s1970_s6 = smov 256   ;;  %s1151_s2 = int_to_ptr.vmem [resolvable:$true] %s1150_s2 }
  0x63   :  { %1012 = vmatpush.bf16.msra.mxu1 %v1293_v25  ;;  %v1634_v25 = vld [vmem:[#allocation5 + $0x368] sm:$0xf0]  ;;  %v1834_v13 = vld [vmem:[#allocation5 + $0x3a4] sm:$0xf]  ;;  %s1971_s7 = smov 16  }
  0x64   :  { %1026 = vmatpush.bf16.msra.mxu2 %v1357_v26  ;;  %v1842_v26 = vld [vmem:[#allocation5 + $0x3e4] sm:$0xf] }
  0x65   :  { %1040 = vmatpush.bf16.msra.mxu3 %v1421_v30  ;;  %v1637_v30 = vor.u32 %v1826_v24, %v1634_v25  ;;  %v1701_v34 = vor.u32 %v1842_v26, %v1698_v27  ;;  %v1816_v24 = vld [vmem:[#allocation5 + $0x314] sm:$0xf]  ;;  %v1594_v25 = vld [vmem:[#allocation5 + $0x318] sm:$0xf0] }
  0x66   :  { %999 = vmatpush.bf16.msra.mxu0 %v1221_v36  ;;  %v1824_v36 = vld [vmem:[#allocation5 + $0x354] sm:$0xf]  ;;  %v1658_v27 = vld [vmem:[#allocation5 + $0x398] sm:$0xf0] }
  0x67   :  { %1013 = vmatpush.bf16.msra.mxu1 %v1285_v37  ;;  %v1626_v37 = vld [vmem:[#allocation5 + $0x358] sm:$0xf0]  ;;  %v1832_v26 = vld [vmem:[#allocation5 + $0x394] sm:$0xf] }
  0x68   :  { %1027 = vmatpush.bf16.msra.mxu2 %v1349_v38  ;;  %v1840_v38 = vld [vmem:[#allocation5 + $0x3d4] sm:$0xf] }
  0x69   :  { %1041 = vmatpush.bf16.msra.mxu3 %v1413_v45  ;;  %v1629_v45 = vor.u32 %v1824_v36, %v1626_v37  ;;  %v1693_v49 = vor.u32 %v1840_v38, %v1690_v40  ;;  %v1814_v36 = vld [vmem:[#allocation5 + $0x304] sm:$0xf]  ;;  %v1586_v37 = vld [vmem:[#allocation5 + $0x308] sm:$0xf0] }
  0x6a   :  { %1000 = vmatpush.bf16.msra.mxu0 %v1213_v52  ;;  %v1618_v52 = vld [vmem:[#allocation5 + $0x348] sm:$0xf0]  ;;  %v1830_v38 = vld [vmem:[#allocation5 + $0x384] sm:$0xf] }
  0x6b   :  { %1014 = vmatpush.bf16.msra.mxu1 %v1277_v55  ;;  %v1788_v55 = vld [vmem:[#allocation5 + $0x234] sm:$0xf]  ;;  %v1650_v40 = vld [vmem:[#allocation5 + $0x388] sm:$0xf0] }
  0x6c   :  { %1028 = vmatpush.bf16.msra.mxu2 %v1341_v56  ;;  %v1482_v56 = vld [vmem:[#allocation5 + $0x238] sm:$0xf0] }
  0x6d   :  { %1042 = vmatpush.bf16.msra.mxu3 %v1405_v61  ;;  %v1820_v61 = vld [vmem:[#allocation5 + $0x334] sm:$0xf]  ;;  %v1485_v2 = vor.u32 %v1788_v55, %v1482_v56  ;;  %v196_v56 = vld [vmem:[#allocation7] sm:$0x3] }
  0x6e   :  { %1001 = vmatpush.bf16.msra.mxu0 %v1205_v5  ;;  %v1613_v4 = vor.u32 %v1820_v61, %v1610_v62  ;;  %v1786_v5 = vld [vmem:[#allocation5 + $0x224] sm:$0xf]  ;;  %v198_v57 = vperm.slane %v196_v56, 0  ;;  %v199_v62 = vperm.slane %v196_v56, 1 }
  0x6f   :  { %1015 = vmatpush.bf16.msra.mxu1 %v1269_v9  ;;  %v1538_v9 = vld [vmem:[#allocation5 + $0x2a8] sm:$0xf0] }
  0x70   :  { %1029 = vmatpush.bf16.msra.mxu2 %v1333_v11  ;;  %v1818_v11 = vld [vmem:[#allocation5 + $0x324] sm:$0xf] }
  0x71   :  { %1043 = vmatpush.bf16.msra.mxu3 %v1397_v14  ;;  %1002 = vmatmul.bf16.vlgmr.msra.gmra.mxu0 %v2001_v58  ;;  %v1682_v58 = vld [vmem:[#allocation5 + $0x3c8] sm:$0xf0] }
  0x72   :  { %1050 = vmatpush.bf16.msrb.mxu0 %v1517_v15  ;;  %1016 = vmatmul.bf16.vlgmr.msra.gmra.mxu1 %v2007_v10  ;;  %v1621_v10 = vor.u32 %v1822_v51, %v1618_v52  ;;  %v1685_v59 = vor.u32 %v1838_v53, %v1682_v58  ;;  %v1666_v14 = vld [vmem:[#allocation5 + $0x3a8] sm:$0xf0]  ;;  %v1477_v15 = vor.u32 %v1786_v5, %v1474_v6 }
  0x73   :  { %1064 = vmatpush.bf16.msrb.mxu1 %v1581_v16  ;;  %1030 = vmatmul.bf16.vlgmr.msra.gmra.mxu2 %v2003_v1  ;;  %v1806_v1 = vld [vmem:[#allocation5 + $0x2c4] sm:$0xf]  ;;  %v1541_v16 = vor.u32 %v1802_v7, %v1538_v9 }
  0x74   :  { %1078 = vmatpush.bf16.msrb.mxu2 %v1645_v18  ;;  %1044 = vmatmul.bf16.vlgmr.msra.gmra.mxu3 %v2009_v17  ;;  %v1493_v17 = vor.u32 %v1790_v46, %v1490_v48  ;;  %v1557_v54 = vor.u32 %v1806_v1, %v1554_v50  ;;  %v1605_v18 = vor.u32 %v1818_v11, %v1602_v12 }
  0x75   :  { %1092 = vmatpush.bf16.msrb.mxu3 %v1709_v22  ;;  %v1669_v22 = vor.u32 %v1834_v13, %v1666_v14  ;;  %v1653_v46 = vor.u32 %v1830_v38, %v1650_v40 }
  0x76   :  { %1051 = vmatpush.bf16.msrb.mxu0 %v1509_v28  ;;  %v1469_v28 = vor.u32 %v1784_v19, %v1466_v20 }
  0x77   :  { %1065 = vmatpush.bf16.msrb.mxu1 %v1573_v29  ;;  %v1533_v29 = vor.u32 %v1800_v21, %v1530_v23 }
  0x78   :  { %1079 = vmatpush.bf16.msrb.mxu2 %v1637_v30  ;;  %v1597_v30 = vor.u32 %v1816_v24, %v1594_v25 }
  0x79   :  { %1093 = vmatpush.bf16.msrb.mxu3 %v1701_v34  ;;  %v1661_v34 = vor.u32 %v1832_v26, %v1658_v27 }
  0x7a   :  { %1052 = vmatpush.bf16.msrb.mxu0 %v1501_v41  ;;  %v1461_v41 = vor.u32 %v1782_v31, %v1458_v32 }
  0x7b   :  { %1066 = vmatpush.bf16.msrb.mxu1 %v1565_v42  ;;  %v1525_v42 = vor.u32 %v1798_v33, %v1522_v35 }
  0x7c   :  { %1080 = vmatpush.bf16.msrb.mxu2 %v1629_v45  ;;  %v1589_v45 = vor.u32 %v1814_v36, %v1586_v37 }
  0x7d   :  { %1094 = vmatpush.bf16.msrb.mxu3 %v1693_v49 }
  0x7e   :  { %1053 = vmatpush.bf16.msrb.mxu0 %v1493_v17 }
  0x7f   :  { %1067 = vmatpush.bf16.msrb.mxu1 %v1557_v54 }
  0x80   :  { %1081 = vmatpush.bf16.msrb.mxu2 %v1621_v10 }
  0x81   :  { %1095 = vmatpush.bf16.msrb.mxu3 %v1685_v59 }
  0x82   :  { %1054 = vmatpush.bf16.msrb.mxu0 %v1485_v2 }
  0x83   :  { %1068 = vmatpush.bf16.msrb.mxu1 %v1549_v3 }
  0x84   :  { %1082 = vmatpush.bf16.msrb.mxu2 %v1613_v4 }
  0x85   :  { %1096 = vmatpush.bf16.msrb.mxu3 %v1677_v8 }
  0x86   :  { %1055 = vmatpush.bf16.msrb.mxu0 %v1477_v15 }
  0x87   :  { %1069 = vmatpush.bf16.msrb.mxu1 %v1541_v16 }
  0x88   :  { %1083 = vmatpush.bf16.msrb.mxu2 %v1605_v18 }
  0x89   :  { %1097 = vmatpush.bf16.msrb.mxu3 %v1669_v22 }
  0x8a   :  { %1056 = vmatpush.bf16.msrb.mxu0 %v1469_v28 }
  0x8b   :  { %1070 = vmatpush.bf16.msrb.mxu1 %v1533_v29 }
  0x8c   :  { %1084 = vmatpush.bf16.msrb.mxu2 %v1597_v30 }
  0x8d   :  { %1098 = vmatpush.bf16.msrb.mxu3 %v1661_v34 }
  0x8e   :  { %1057 = vmatpush.bf16.msrb.mxu0 %v1461_v41 }
  0x8f   :  { %1071 = vmatpush.bf16.msrb.mxu1 %v1525_v42 }
  0x90   :  { %1085 = vmatpush.bf16.msrb.mxu2 %v1589_v45 }
  0x91   :  { %1099 = vmatpush.bf16.msrb.mxu3 %v1653_v46  ;;  %1058 = vmatmul.bf16.vlgmr.msrb.gmra.mxu0 %v2013_v39 }
  0x92   :  { %1072 = vmatmul.bf16.vlgmr.msrb.gmra.mxu1 %v2017_v44 }
  0x93   :  { %1086 = vmatmul.bf16.vlgmr.msrb.gmra.mxu2 %v2015_v43 }
  0x94   :  { %1100 = vmatmul.bf16.vlgmr.msrb.gmra.mxu3 %v2019_v47 }
  0xae   :  { %v891_v48 = vpop.f32.mrf.mxu0 }
  0xaf   :  { %v905_v1 = vpop.f32.mrf.mxu1  ;;  %v892_v59 = vadd.f32 %v891_v48, %v198_v57 }
  0xb1   :  { %v906_v61 = vadd.f32 %v905_v1, %v892_v59 }
  0xb6   :  { %v919_v49 = vpop.f32.mrf.mxu2  ;;  %v893_v51 = vpop.f32.mrf.mxu0 }
  0xb7   :  { %v933_v50 = vpop.f32.mrf.mxu3  ;;  %v907_v52 = vpop.f32.mrf.mxu1  ;;  %v920_v0 = vadd.f32 %v919_v49, %v906_v61  ;;  %v894_v4 = vadd.f32 %v893_v51, %v198_v57 }
  0xb9   :  { %v934_v6 = vadd.f32 %v933_v50, %v920_v0  ;;  %v908_v9 = vadd.f32 %v907_v52, %v894_v4 }
  0xbe   :  { %v921_v53 = vpop.f32.mrf.mxu2 }
  0xbf   :  { %v935_v58 = vpop.f32.mrf.mxu3  ;;  %v922_v15 = vadd.f32 %v921_v53, %v908_v9 }
  0xc1   :  { %v936_v23 = vadd.f32 %v935_v58, %v922_v15 }
  0xce   :  { %v947_v17 = vpop.f32.mrf.mxu0 }
  0xcf   :  { %v961_v54 = vpop.f32.mrf.mxu1  ;;  %v948_v12 = vadd.f32 %v947_v17, %v934_v6 }
  0xd1   :  { %v962_v18 = vadd.f32 %v961_v54, %v948_v12 }
  0xd6   :  { %v975_v10 = vpop.f32.mrf.mxu2  ;;  %v949_v39 = vpop.f32.mrf.mxu0 }
  0xd7   :  { %v989_v55 = vpop.f32.mrf.mxu3  ;;  %v963_v44 = vpop.f32.mrf.mxu1  ;;  %v976_v26 = vadd.f32 %v975_v10, %v962_v18  ;;  %v950_v28 = vadd.f32 %v949_v39, %v936_v23 }
  0xd9   :  { %v990_v31 = vadd.f32 %v989_v55, %v976_v26  ;;  %v964_v36 = vadd.f32 %v963_v44, %v950_v28 }
  0xdb   :  { %v1106_v41 = vmul.f32 %v990_v31, %v990_v31 }
  0xde   :  { %v977_v43 = vpop.f32.mrf.mxu2 }
  0xdf   :  { %v991_v60 = vpop.f32.mrf.mxu3  ;;  %v978_v40 = vadd.f32 %v977_v43, %v964_v36 }
  0xe1   :  { %v992_v49 = vadd.f32 %v991_v60, %v978_v40 }
  0xe3   :  { %v1108_v53 = vmul.f32 %v992_v49, %v992_v49 }
  0xee   :  { %v1003_v47 = vpop.f32.mrf.mxu0 }
  0xef   :  { %v1017_v63 = vpop.f32.mrf.mxu1  ;;  %v1004_v2 = vadd.f32 %v1003_v47, %v199_v62 }
  0xf1   :  { %v1018_v7 = vadd.f32 %v1017_v63, %v1004_v2 }
  0xf6   :  { %v1031_v3 = vpop.f32.mrf.mxu2  ;;  %v1005_v8 = vpop.f32.mrf.mxu0 }
  0xf7   :  { %v1045_v5 = vpop.f32.mrf.mxu3  ;;  %v1019_v11 = vpop.f32.mrf.mxu1  ;;  %v1032_v13 = vadd.f32 %v1031_v3, %v1018_v7  ;;  %v1006_v14 = vadd.f32 %v1005_v8, %v199_v62 }
  0xf9   :  { %v1046_v19 = vadd.f32 %v1045_v5, %v1032_v13  ;;  %v1020_v20 = vadd.f32 %v1019_v11, %v1006_v14 }
  0xfe   :  { %v1033_v16 = vpop.f32.mrf.mxu2 }
  0xff   :  { %v1047_v21 = vpop.f32.mrf.mxu3  ;;  %v1034_v27 = vadd.f32 %v1033_v16, %v1020_v20 }
 0x101   :  { %v1048_v32 = vadd.f32 %v1047_v21, %v1034_v27 }
 0x10e   :  { %v1059_v22 = vpop.f32.mrf.mxu0 }
 0x10f   :  { %v1060_v24 = vadd.f32 %v1059_v22, %v1046_v19  ;;  %v1073_v25 = vpop.f32.mrf.mxu1 }
 0x111   :  { %v1074_v29 = vadd.f32 %v1073_v25, %v1060_v24 }
 0x116   :  { %v1087_v30 = vpop.f32.mrf.mxu2  ;;  %v1061_v35 = vpop.f32.mrf.mxu0 }
 0x117   :  { %v1088_v33 = vadd.f32 %v1087_v30, %v1074_v29  ;;  %v1101_v34 = vpop.f32.mrf.mxu3  ;;  %v1062_v38 = vadd.f32 %v1061_v35, %v1048_v32  ;;  %v1075_v45 = vpop.f32.mrf.mxu1 }
 0x119   :  { %v1102_v37 = vadd.f32 %v1101_v34, %v1088_v33  ;;  %v1076_v46 = vadd.f32 %v1075_v45, %v1062_v38 }
 0x11b   :  { %v1107_v42 = vmul.f32 %v1102_v37, %v1102_v37 }
 0x11d   :  { %v1110_v48 = vadd.f32 %v1107_v42, %v1106_v41 }
 0x11e   :  { %v1089_v1 = vpop.f32.mrf.mxu2 }
 0x11f   :  { %v1090_v50 = vadd.f32 %v1089_v1, %v1076_v46  ;;  %1111 = vadd.xlane.f32.xlu0 %v1110_v48  ;;  %v1103_v51 = vpop.f32.mrf.mxu3 }
 0x121   :  { %v1104_v52 = vadd.f32 %v1103_v51, %v1090_v50 }
 0x123   :  { %v1109_v58 = vmul.f32 %v1104_v52, %v1104_v52 }
 0x125   :  { %v1113_v17 = vadd.f32 %v1109_v58, %v1108_v53 }
 0x127   :  { %1114 = vadd.xlane.f32.xlu0 %v1113_v17 }
 0x192   :  { %v1112_v54 = vpop.xlane.xlu0 %1111 }
 0x193   :  { %v1116_v10 = vmax.f32 %v1112_v54, 1e-24 }
 0x195   :  { %1856 = vrsqrt.f32 %v1116_v10  ;;  %vm1124_vm1 = vweird.f32 %v1116_v10 }
 0x19a   :  { %v1115_v55 = vpop.xlane.xlu0 %1114 }
 0x19b   :  { %v1857_v56 = vpop.eup %1856  ;;  %v1117_v39 = vmax.f32 %v1115_v55, 1e-24 }
 0x19c   :  { %v1119_v57 = vmul.f32 %v1857_v56, %v1116_v10  ;;  %vm1125_vm0 = vweird.f32 %v1857_v56 }
 0x19d   :  { %1858 = vrsqrt.f32 %v1117_v39  ;;  %vm1126_vm2 = vmor %vm1124_vm1, %vm1125_vm0  ;;  %vm1134_vm4 = vweird.f32 %v1117_v39 }
 0x19e   :  { %v1120_v44 = vmul.f32 %v1857_v56, %v1119_v57 }
 0x1a0   :  { %v1121_v59 = vmul.f32 0.5, %v1120_v44 }
 0x1a2   :  { %v1122_v43 = vsub.f32 1.5, %v1121_v59 }
 0x1a3   :  { %v1859_v60 = vpop.eup %1858 }
 0x1a4   :  { %v1123_v47 = vmul.f32 %v1857_v56, %v1122_v43  ;;  %v1129_v61 = vmul.f32 %v1859_v60, %v1117_v39  ;;  %vm1135_vm3 = vweird.f32 %v1859_v60 }
 0x1a5   :  { %vm1136_vm5 = vmor %vm1134_vm4, %vm1135_vm3 }
 0x1a6   :  { %v1127_v62 = vsel %vm1126_vm2, %v1857_v56, %v1123_v47  ;;  %v1130_v63 = vmul.f32 %v1859_v60, %v1129_v61 }
 0x1a7   :  { %v1138_v0 = vmul.f32 %v1127_v62, %v990_v31  ;;  %v1139_v2 = vmul.f32 %v1127_v62, %v1102_v37 }
 0x1a8   :  { %v1131_v3 = vmul.f32 0.5, %v1130_v63 }
 0x1a9   :  { %1142 = vst [vmem:[#allocation8] sm:$0xff] %v1138_v0 }
 0x1aa   :  { %1143 = vst [vmem:[#allocation8 + $0x8] sm:$0xff] %v1139_v2  ;;  %v1132_v4 = vsub.f32 1.5, %v1131_v3 }
 0x1ac   :  { %v1133_v5 = vmul.f32 %v1859_v60, %v1132_v4 }
 0x1ae   :  { %v1137_v6 = vsel %vm1136_vm5, %v1859_v60, %v1133_v5 }
 0x1af   :  { %v1140_v7 = vmul.f32 %v1137_v6, %v992_v49  ;;  %v1141_v8 = vmul.f32 %v1137_v6, %v1104_v52 }
 0x1b1   :  { %1144 = vst [vmem:[#allocation8 + $0x10] sm:$0xff] %v1140_v7 }
 0x1b2   :  { %1145 = vst [vmem:[#allocation8 + $0x18] sm:$0xff] %v1141_v8 }
 0x1b3   :  { %1158 = dma.vmem_to_hbm [thread:$0]  %s1151_s2, 512, %s1153_s5, [#allocation4], %s1970_s6, %s1970_s6, %s1971_s7  }
 0x1b4   :  { %1960 = dma.done.wait [#allocation4], 512  }
 0x1b5   :  { %1961 = vsyncadd [#allocation4], 4294966784 }
 0x1b6   :  { %1163 = vsyncpa [#allocation3], 1 }
 0x1b7   :  { %1164 = vsyncpa [#allocation6], 1 }
 0x1b8   :  { %1165 = vsyncpa [#allocation4], 1 }

</bundles_post_ra>
